<compile_context>
chip_gen: v5e
topology: v5e:2x2
jax: 0.10.0
libtpu: 0.0.40
codegen_flags: <defaults>
</compile_context>

<pallas_src>
import functools
import math

import jax
import jax.numpy as jnp
from jax.experimental import pallas as pl
from jax.experimental.pallas import tpu as pltpu

# Largest K taken as a single full-depth reduction step (no K grid axis, no
# padding of any operand).  T5 d_model (512 / 768 / 1024 / 2048) always fits.
_K_SINGLE_PASS_MAX = 2048
# Cross-generation VMEM budget for the double-buffered working set.  v7x has
# only 64 MiB physical VMEM (v5e/v6e have 128), so never plan above ~44 MiB.
_VMEM_BUDGET = 44 << 20
_VMEM_LIMIT_CAP = 48 << 20


def _round_up(x: int, m: int) -> int:
    return (x + m - 1) // m * m


def _upcast_linear_kernel(x_ref, w_ref, b_ref, o_ref, *, scale, module_dtype):
    """One (tm, tn) output block; K is the innermost ('arbitrary') grid axis.

    o_ref is f32 and its block index (i, j) does not depend on k, so it stays
    resident in VMEM across the whole reduction and doubles as the
    accumulator (no separate scratch).
    """
    k = pl.program_id(2)

    @pl.when(k == 0)
    def _init():
        o_ref[...] = jnp.zeros_like(o_ref)

    # bf16 x bf16 operands on the MXU, f32 accumulation into the output block.
    o_ref[...] += jnp.dot(x_ref[...], w_ref[...],
                          preferred_element_type=jnp.float32)

    @pl.when(k == pl.num_programs(2) - 1)
    def _epilogue():
        y = o_ref[...] + b_ref[...].astype(jnp.float32)
        # module(input) produces `module_dtype` (bf16 Linear output);
        # UpCastWrapper then does .to(float32) * scale.  One round-trip.
        y = y.astype(module_dtype)
        o_ref[...] = y.astype(jnp.float32) * jnp.float32(scale)


def make_upcast_linear(w, b, scale=1.0):
    """Build the fused forward for UpCastWrapper(Linear(W, b), scale).

    All parameter-side preparation (a one-time zero-pad of W along K when K
    must be tiled) happens here, never in the per-call hot path.

    w: (K, N), b: (N,) in the wrapped module's dtype (typically bf16).
    Returns forward(x): (..., K) -> (..., N) float32.
    """
    K, N = w.shape
    module_dtype = w.dtype
    itemsize = jnp.dtype(module_dtype).itemsize

    # ---- K (reduction) policy: single full-depth step when it fits VMEM. ----
    if K <= _K_SINGLE_PASS_MAX:
        tk, Kp = K, K          # one reduction step, no K padding anywhere
        w_prep = w
    else:
        tk = 512
        Kp = _round_up(K, tk)
        w_prep = jnp.pad(w, ((0, Kp - K), (0, 0))) if Kp != K else w
    b_prep = b.reshape(1, N)

    def forward(x):
        *batch, Kx = x.shape
        assert Kx == K, f"expected last dim {K}, got {Kx}"
        M = math.prod(batch) if batch else 1
        x2 = x.reshape(M, K).astype(module_dtype)
        if Kp != K:
            # Only per-call pad (x is tiny next to the weight); zeros are
            # neutral for the matmul.
            x2 = jnp.pad(x2, ((0, 0), (0, Kp - K)))

        # ---- M / N tiling ----------------------------------------------
        # tm covers M in one pass (single weight read) whenever M <= 1024;
        # tm == M is always a legal block (equal to the full dim).
        tm = M if M <= 1024 else 1024
        # Decode / small-M regime: widen the N slab so each grid step moves
        # a big weight tile and the f32 stores stay lane-dense.
        tn_cap = 4096 if M <= 256 else 2048
        tn = N if N <= tn_cap else tn_cap     # tn_cap is a multiple of 128

        def footprint(tm_, tn_):
            # double-buffered bf16 x / W / bias blocks
            # + double-buffered f32 output block (also the accumulator).
            return (2 * (tm_ * tk + tk * tn_ + tn_) * itemsize
                    + 2 * tm_ * tn_ * 4)

        # Safety net: shrink tiles if a pathological shape overshoots the
        # cross-generation VMEM budget (never triggers for the defaults).
        while tn > 512 and footprint(tm, tn) > _VMEM_BUDGET:
            tn = _round_up(tn // 2, 128)
        while tm > 256 and footprint(tm, tn) > _VMEM_BUDGET:
            tm = _round_up(tm // 2, 16)

        gi, gj, gk = pl.cdiv(M, tm), pl.cdiv(N, tn), Kp // tk
        grid = (gi, gj, gk)

        vmem_limit = int(min(max(footprint(tm, tn) + (4 << 20), 32 << 20),
                             _VMEM_LIMIT_CAP))

        cost = pl.CostEstimate(
            flops=2 * M * Kp * N,
            transcendentals=0,
            # x is re-streamed once per N tile, W (+ bias) once per M tile.
            bytes_accessed=(M * Kp * itemsize) * gj
                           + (Kp * N * itemsize) * gi
                           + (N * itemsize) * gi
                           + M * N * 4,
        )

        out = pl.pallas_call(
            functools.partial(_upcast_linear_kernel, scale=float(scale),
                              module_dtype=module_dtype),
            out_shape=jax.ShapeDtypeStruct((M, N), jnp.float32),
            grid_spec=pltpu.PrefetchScalarGridSpec(
                num_scalar_prefetch=0,
                grid=grid,
                in_specs=[
                    pl.BlockSpec((tm, tk), lambda i, j, k: (i, k)),  # x rows
                    pl.BlockSpec((tk, tn), lambda i, j, k: (k, j)),  # weight
                    pl.BlockSpec((1, tn), lambda i, j, k: (0, j)),   # bias
                ],
                out_specs=pl.BlockSpec((tm, tn), lambda i, j, k: (i, j)),
            ),
            compiler_params=pltpu.CompilerParams(
                dimension_semantics=("parallel", "parallel", "arbitrary"),
                vmem_limit_bytes=vmem_limit,
            ),
            cost_estimate=cost,
        )(x2, w_prep, b_prep)

        return out.reshape(*batch, N)

    # TODO(synk): if `scale` must vary at runtime without recompilation, pass
    # it as an SMEM scalar (num_scalar_prefetch=1) instead of a static value.
    return jax.jit(forward)


def reference_forward(x, w, b, scale):
    # Pure-JAX reference of the same contract: f32-accumulated Linear, one
    # round-trip to the module (weight) dtype, then upcast * scale.
    y = (jnp.dot(x.astype(jnp.float32), w.astype(jnp.float32))
         + b.astype(jnp.float32)).astype(w.dtype)
    return y.astype(jnp.float32) * jnp.float32(scale)


if __name__ == "__main__":
    key = jax.random.PRNGKey(0)

    def make_case(key, B, S, K, N):
        kx, kw, kb = jax.random.split(key, 3)
        x = jax.random.normal(kx, (B, S, K), dtype=jnp.float32).astype(jnp.bfloat16)
        w = (jax.random.normal(kw, (K, N), dtype=jnp.float32) * 0.02).astype(jnp.bfloat16)
        b = (jax.random.normal(kb, (N,), dtype=jnp.float32) * 0.01).astype(jnp.bfloat16)
        return x, w, b

    scale = 0.5
    k1, k2, k3 = jax.random.split(key, 3)

    # Case 1: small tile-aligned shapes (T5-style projection), single-K pass.
    x, w, b = make_case(k1, B=2, S=8, K=128, N=256)
    fwd = make_upcast_linear(w, b, scale=scale)
    out = jax.block_until_ready(fwd(x))
    ref = reference_forward(x.reshape(-1, 128), w, b, scale).reshape(2, 8, 256)
    assert out.shape == (2, 8, 256) and out.dtype == jnp.float32
    assert jnp.allclose(out, ref, atol=2e-2, rtol=2e-2)

    # Case 2: ragged M / K / N -- no host-side padding or output slicing.
    xr, wr, br = make_case(k2, B=2, S=7, K=130, N=300)
    fwd_r = make_upcast_linear(wr, br, scale=scale)
    outr = jax.block_until_ready(fwd_r(xr))
    refr = reference_forward(xr.reshape(-1, 130), wr, br, scale).reshape(2, 7, 300)
    assert outr.shape == (2, 7, 300) and outr.dtype == jnp.float32
    assert jnp.allclose(outr, refr, atol=2e-2, rtol=2e-2)

    # Case 3: K above the single-pass threshold -> exercises the K-reduction
    # grid and the accumulate-directly-into-o_ref path (2560 = 5 * tk).
    xk, wk, bk = make_case(k3, B=2, S=8, K=2560, N=256)
    fwd_k = make_upcast_linear(wk, bk, scale=scale)
    outk = jax.block_until_ready(fwd_k(xk))
    refk = reference_forward(xk.reshape(-1, 2560), wk, bk, scale).reshape(2, 8, 256)
    assert outk.shape == (2, 8, 256) and outk.dtype == jnp.float32
    assert jnp.allclose(outk, refk, atol=2e-2, rtol=2e-2)

    print("KERNEL_OK")
</pallas_src>

<mosaic_0001>
module attributes {stable_mosaic.version = 11 : i64} {
  func.func @_upcast_linear_kernel(%arg0: i32, %arg1: i32, %arg2: i32, %arg3: memref<16x128xbf16, #tpu.memory_space<vmem>>, %arg4: memref<128x256xbf16, #tpu.memory_space<vmem>>, %arg5: memref<1x256xbf16, #tpu.memory_space<vmem>>, %arg6: memref<16x256xf32, #tpu.memory_space<vmem>>) attributes {dimension_semantics = [#tpu.dimension_semantics<parallel>, #tpu.dimension_semantics<parallel>, #tpu.dimension_semantics<arbitrary>], iteration_bounds = array<i64: 1, 1, 1>, scalar_prefetch = 0 : i64, scratch_operands = 0 : i64, tpu.core_type = #tpu.core_type<tc>, window_params = [{transform_indices = @transform_0, window_bounds = array<i64: 16, 128>}, {transform_indices = @transform_1, window_bounds = array<i64: 128, 256>}, {transform_indices = @transform_2, window_bounds = array<i64: 1, 256>}, {transform_indices = @transform_3, window_bounds = array<i64: 16, 256>}]} {
    %c0_i32 = arith.constant 0 : i32
    %0 = arith.cmpi eq, %arg2, %c0_i32 : i32
    %1 = arith.extui %0 : i1 to i32
    %c0_i32_0 = arith.constant 0 : i32
    %2 = arith.cmpi ne, %1, %c0_i32_0 : i32
    scf.if %2 {
      %cst_10 = arith.constant 0.000000e+00 : f32
      %12 = vector.broadcast %cst_10 : f32 to vector<16x256xf32>
      %c0_11 = arith.constant 0 : index
      %c0_12 = arith.constant 0 : index
      %13 = vector.load %arg6[%c0_11, %c0_12] : memref<16x256xf32, #tpu.memory_space<vmem>>, vector<16x256xf32>
      tpu.vector_store %arg6[%c0_11, %c0_12], %12 {strides = array<i32>} : memref<16x256xf32, #tpu.memory_space<vmem>>, vector<16x256xf32>,
    } else {
    }
    %c0 = arith.constant 0 : index
    %c0_1 = arith.constant 0 : index
    %3 = vector.load %arg6[%c0, %c0_1] : memref<16x256xf32, #tpu.memory_space<vmem>>, vector<16x256xf32>
    %c0_2 = arith.constant 0 : index
    %c0_3 = arith.constant 0 : index
    %4 = vector.load %arg3[%c0_2, %c0_3] : memref<16x128xbf16, #tpu.memory_space<vmem>>, vector<16x128xbf16>
    %c0_4 = arith.constant 0 : index
    %c0_5 = arith.constant 0 : index
    %5 = vector.load %arg4[%c0_4, %c0_5] : memref<128x256xbf16, #tpu.memory_space<vmem>>, vector<128x256xbf16>
    %cst = arith.constant dense<0.000000e+00> : vector<16x256xf32>
    %6 = tpu.matmul %4, %5, %cst {dimension_numbers = #tpu.dot_dimension_numbers<[1], [0], [0], [1], [0, 0, 1, 1], [], []>} : vector<16x128xbf16>, vector<128x256xbf16>, vector<16x256xf32> -> vector<16x256xf32>
    %7 = arith.addf %3, %6 : vector<16x256xf32>
    %c0_6 = arith.constant 0 : index
    %c0_7 = arith.constant 0 : index
    %8 = vector.load %arg6[%c0_6, %c0_7] : memref<16x256xf32, #tpu.memory_space<vmem>>, vector<16x256xf32>
    tpu.vector_store %arg6[%c0_6, %c0_7], %7 {strides = array<i32>} : memref<16x256xf32, #tpu.memory_space<vmem>>, vector<16x256xf32>,
    %c0_i32_8 = arith.constant 0 : i32
    %9 = arith.cmpi eq, %arg2, %c0_i32_8 : i32
    %10 = arith.extui %9 : i1 to i32
    %c0_i32_9 = arith.constant 0 : i32
    %11 = arith.cmpi ne, %10, %c0_i32_9 : i32
    scf.if %11 {
      %c0_10 = arith.constant 0 : index
      %c0_11 = arith.constant 0 : index
      %12 = vector.load %arg6[%c0_10, %c0_11] : memref<16x256xf32, #tpu.memory_space<vmem>>, vector<16x256xf32>
      %c0_12 = arith.constant 0 : index
      %c0_13 = arith.constant 0 : index
      %13 = vector.load %arg5[%c0_12, %c0_13] : memref<1x256xbf16, #tpu.memory_space<vmem>>, vector<1x256xbf16>
      %14 = arith.extf %13 : vector<1x256xbf16> to vector<1x256xf32>
      %15 = vector.broadcast %14 : vector<1x256xf32> to vector<16x256xf32>
      %16 = arith.addf %12, %15 : vector<16x256xf32>
      %17 = arith.truncf %16 : vector<16x256xf32> to vector<16x256xbf16>
      %18 = arith.extf %17 : vector<16x256xbf16> to vector<16x256xf32>
      %cst_14 = arith.constant 5.000000e-01 : f32
      %19 = vector.broadcast %cst_14 : f32 to vector<16x256xf32>
      %20 = arith.mulf %18, %19 : vector<16x256xf32>
      %c0_15 = arith.constant 0 : index
      %c0_16 = arith.constant 0 : index
      %21 = vector.load %arg6[%c0_15, %c0_16] : memref<16x256xf32, #tpu.memory_space<vmem>>, vector<16x256xf32>
      tpu.vector_store %arg6[%c0_15, %c0_16], %20 {strides = array<i32>} : memref<16x256xf32, #tpu.memory_space<vmem>>, vector<16x256xf32>,
    } else {
    }
    return
  }
  func.func @transform_0(%arg0: i32, %arg1: i32, %arg2: i32) -> (i32, i32) {
    %c0_i32 = arith.constant 0 : i32
    return %arg0, %arg2 : i32, i32
  }
  func.func @transform_1(%arg0: i32, %arg1: i32, %arg2: i32) -> (i32, i32) {
    %c0_i32 = arith.constant 0 : i32
    return %arg2, %arg1 : i32, i32
  }
  func.func @transform_2(%arg0: i32, %arg1: i32, %arg2: i32) -> (i32, i32) {
    %c0_i32 = arith.constant 0 : i32
    %c0_i32_0 = arith.constant 0 : i32
    return %c0_i32, %arg1 : i32, i32
  }
  func.func @transform_3(%arg0: i32, %arg1: i32, %arg2: i32) -> (i32, i32) {
    %c0_i32 = arith.constant 0 : i32
    return %arg0, %arg1 : i32, i32
  }
}

</mosaic_0001>

<bundles_post_ra>
// kernel: forward.1
= control target key start
LH: loop header
LB: loop body
LE: loop exit
PB: predicated region body
PF: predicated region fallthrough
CT: control target
= control target key end

     0   :  { %8 = vsyncpa [#allocation3], 0  ;;  %s467_s0 = inlined_call_operand.hbm [shape: bf16[16,128], index: 0, kind: input, shape index: {}]   ;;  %s468_s1 = inlined_call_operand.hbm [shape: bf16[128,256], index: 1, kind: input, shape index: {}]   ;;  %s469_s2 = inlined_call_operand.vmem [shape: bf16[1,256], index: 2, kind: input, shape index: {}]   ;;  %s470_s3 = inlined_call_operand.hbm [shape: f32[16,256], index: 3, kind: output, shape index: {}]  }
   0x1   :  { %9 = vsyncpa [#allocation6], 0 }
   0x2   :  { %10 = vsyncpa [#allocation4], 0  ;;  %s15_s14 = sshll.u32 %s467_s0, 4  ;;  %s426_s15 = smov [#allocation2]   ;;  %s16_s14 = int_to_ptr.hbm [resolvable:$true] %s15_s14 }
   0x3   :  { %s17_s16 = sshll.u32 %s426_s15, 4  ;;  %s28_s19 = sshll.u32 %s468_s1, 4  ;;  %s18_s16 = int_to_ptr.vmem [resolvable:$true] %s17_s16  ;;  %s29_s19 = int_to_ptr.hbm [resolvable:$true] %s28_s19 }
   0x4   :  { %s427_s20 = smov 64   ;;  %s428_s21 = smov 4  }
   0x5   :  { %23 = dma.hbm_to_vmem [thread:$0]  %s16_s14, 128, %s18_s16, [#allocation3], %s427_s20, %s427_s20, %s428_s21  }
   0x6   :  { %s429_s22 = smov [#allocation5]   ;;  %s430_s24 = smov 128  }
   0x7   :  { %s30_s23 = sshll.u32 %s429_s22, 4  ;;  %s431_s25 = smov 8   ;;  %s31_s23 = int_to_ptr.vmem [resolvable:$true] %s30_s23 }
   0x8   :  { %36 = dma.hbm_to_vmem [thread:$0]  %s29_s19, 2048, %s31_s23, [#allocation6], %s430_s24, %s430_s24, %s431_s25  }
   0x9   :  { %420 = dma.done.wait [#allocation3], 128  }
   0xa   :  { %421 = vsyncadd [#allocation3], 4294967168 }
   0xb   :  { %422 = dma.done.wait [#allocation6], 2048  }
   0xc   :  { %423 = vsyncadd [#allocation6], 4294965248  ;;  %v315_v0 = vld [vmem:[#allocation5 + $0x70] sm:$0xf]  ;;  %v337_v1 = vld [vmem:[#allocation5 + $0x74] sm:$0xf0] }
   0xd   :  { %v336_v2 = vld [vmem:[#allocation5 + $0x74] sm:$0xf]  ;;  %v316_v3 = vor.u32 %v337_v1, %v315_v0  ;;  %v317_v4 = vld [vmem:[#allocation5 + $0x78] sm:$0xf0]  ;;  %v307_v5 = vld [vmem:[#allocation5 + $0x60] sm:$0xf] }
   0xe   :  { %v335_v6 = vld [vmem:[#allocation5 + $0x64] sm:$0xf0]  ;;  %v320_v7 = vor.u32 %v336_v2, %v317_v4  ;;  %v334_v8 = vld [vmem:[#allocation5 + $0x64] sm:$0xf]  ;;  %v309_v9 = vld [vmem:[#allocation5 + $0x68] sm:$0xf0] }
   0xf   :  { %163 = vmatpush.bf16.msra.mxu0 %v316_v3  ;;  %v308_v10 = vor.u32 %v335_v6, %v307_v5  ;;  %v312_v11 = vor.u32 %v334_v8, %v309_v9  ;;  %v299_v12 = vld [vmem:[#allocation5 + $0x50] sm:$0xf]  ;;  %v333_v13 = vld [vmem:[#allocation5 + $0x54] sm:$0xf0]  ;;  %v332_v14 = vld [vmem:[#allocation5 + $0x54] sm:$0xf] }
  0x10   :  { %177 = vmatpush.bf16.msra.mxu1 %v320_v7  ;;  %v301_v15 = vld [vmem:[#allocation5 + $0x58] sm:$0xf0]  ;;  %v300_v16 = vor.u32 %v333_v13, %v299_v12  ;;  %v291_v18 = vld [vmem:[#allocation5 + $0x40] sm:$0xf]  ;;  %v331_v19 = vld [vmem:[#allocation5 + $0x44] sm:$0xf0] }
  0x11   :  { %v304_v17 = vor.u32 %v332_v14, %v301_v15  ;;  %v330_v20 = vld [vmem:[#allocation5 + $0x44] sm:$0xf]  ;;  %v293_v21 = vld [vmem:[#allocation5 + $0x48] sm:$0xf0]  ;;  %v292_v22 = vor.u32 %v331_v19, %v291_v18  ;;  %v283_v24 = vld [vmem:[#allocation5 + $0x30] sm:$0xf] }
  0x12   :  { %v296_v23 = vor.u32 %v330_v20, %v293_v21  ;;  %v329_v25 = vld [vmem:[#allocation5 + $0x34] sm:$0xf0]  ;;  %v328_v26 = vld [vmem:[#allocation5 + $0x34] sm:$0xf]  ;;  %v285_v27 = vld [vmem:[#allocation5 + $0x38] sm:$0xf0] }
  0x13   :  { %164 = vmatpush.bf16.msra.mxu0 %v308_v10  ;;  %v284_v28 = vor.u32 %v329_v25, %v283_v24  ;;  %v288_v29 = vor.u32 %v328_v26, %v285_v27  ;;  %v275_v30 = vld [vmem:[#allocation5 + $0x20] sm:$0xf]  ;;  %v327_v31 = vld [vmem:[#allocation5 + $0x24] sm:$0xf0]  ;;  %v326_v32 = vld [vmem:[#allocation5 + $0x24] sm:$0xf] }
  0x14   :  { %178 = vmatpush.bf16.msra.mxu1 %v312_v11  ;;  %v277_v33 = vld [vmem:[#allocation5 + $0x28] sm:$0xf0]  ;;  %v276_v34 = vor.u32 %v327_v31, %v275_v30  ;;  %v267_v36 = vld [vmem:[#allocation5 + $0x10] sm:$0xf]  ;;  %v325_v37 = vld [vmem:[#allocation5 + $0x14] sm:$0xf0] }
  0x15   :  { %v280_v35 = vor.u32 %v326_v32, %v277_v33  ;;  %v324_v38 = vld [vmem:[#allocation5 + $0x14] sm:$0xf]  ;;  %v269_v39 = vld [vmem:[#allocation5 + $0x18] sm:$0xf0]  ;;  %v268_v40 = vor.u32 %v325_v37, %v267_v36  ;;  %v259_v42 = vld [vmem:[#allocation5] sm:$0xf] }
  0x16   :  { %v272_v41 = vor.u32 %v324_v38, %v269_v39  ;;  %v323_v43 = vld [vmem:[#allocation5 + $0x4] sm:$0xf0]  ;;  %v322_v44 = vld [vmem:[#allocation5 + $0x4] sm:$0xf]  ;;  %v261_v45 = vld [vmem:[#allocation5 + $0x8] sm:$0xf0] }
  0x17   :  { %165 = vmatpush.bf16.msra.mxu0 %v300_v16  ;;  %v260_v46 = vor.u32 %v323_v43, %v259_v42  ;;  %v264_v47 = vor.u32 %v322_v44, %v261_v45  ;;  %v321_v48 = vld [vmem:[#allocation2] sm:$0xff]  ;;  %s239_s29 = sshll.u32 %s470_s3, 4  ;;  %s433_s30 = smov 256   ;;  %s240_s29 = int_to_ptr.hbm [resolvable:$true] %s239_s29 }
  0x18   :  { %179 = vmatpush.bf16.msra.mxu1 %v304_v17  ;;  %v206_v49 = vld [vmem:[%s469_s2] sm:$0x3]  ;;  %s432_s2 = smov [#allocation7]   ;;  %s434_s4 = smov 16  }
  0x19   :  { %v207_v50 = vunpack.c.l.bf16 %v206_v49  ;;  %s237_s26 = sshll.u32 %s432_s2, 4  ;;  %s238_s26 = int_to_ptr.vmem [resolvable:$true] %s237_s26 }
  0x1b   :  { %166 = vmatpush.bf16.msra.mxu0 %v292_v22  ;;  %v209_v51 = vperm.slane %v207_v50, 0  ;;  %v210_v52 = vperm.slane %v207_v50, 2 }
  0x1c   :  { %180 = vmatpush.bf16.msra.mxu1 %v296_v23 }
  0x1d   :  { %v213_v53 = vperm.slane %v209_v51, 0  ;;  %v214_v55 = vperm.slane %v210_v52, 0 }
  0x1f   :  { %167 = vmatpush.bf16.msra.mxu0 %v284_v28 }
  0x20   :  { %181 = vmatpush.bf16.msra.mxu1 %v288_v29 }
  0x23   :  { %168 = vmatpush.bf16.msra.mxu0 %v276_v34 }
  0x24   :  { %182 = vmatpush.bf16.msra.mxu1 %v280_v35 }
  0x27   :  { %169 = vmatpush.bf16.msra.mxu0 %v268_v40 }
  0x28   :  { %183 = vmatpush.bf16.msra.mxu1 %v272_v41 }
  0x2b   :  { %170 = vmatpush.bf16.msra.mxu0 %v260_v46 }
  0x2c   :  { %184 = vmatpush.bf16.msra.mxu1 %v264_v47 }
  0x2e   :  { %171 = vmatmul.bf16.vlgmr.msra.gmra.mxu0 %v321_v48 }
  0x2f   :  { %185 = vmatmul.bf16.vlgmr.msra.gmra.mxu1 %v321_v48 }
  0xab   :  { %v172_v54 = vpop.f32.mrf.mxu0 }
  0xac   :  { %v186_v56 = vpop.f32.mrf.mxu1  ;;  %v215_v57 = vadd.f32 %v213_v53, %v172_v54 }
  0xad   :  { %v216_v58 = vadd.f32 %v214_v55, %v186_v56 }
  0xaf   :  { %v219_v59 = vpack.c.bf16 %v216_v58, %v215_v57 }
  0xb1   :  { %v221_v60 = vunpack.c.l.bf16 %v219_v59  ;;  %v222_v61 = vunpack.c.h.bf16 %v219_v59 }
  0xb3   :  { %v174_v62 = vpop.f32.mrf.mxu0  ;;  %v225_v0 = vmul.f32 0.5, %v221_v60  ;;  %v226_v1 = vmul.f32 0.5, %v222_v61 }
  0xb4   :  { %v188_v63 = vpop.f32.mrf.mxu1  ;;  %v217_v2 = vadd.f32 %v213_v53, %v174_v62 }
  0xb5   :  { %230 = vst [vmem:[#allocation7 + $0x8] sm:$0xff] %v226_v1  ;;  %v218_v3 = vadd.f32 %v214_v55, %v188_v63 }
  0xb6   :  { %229 = vst [vmem:[#allocation7] sm:$0xff] %v225_v0 }
  0xb7   :  { %v220_v4 = vpack.c.bf16 %v218_v3, %v217_v2 }
  0xb9   :  { %v223_v5 = vunpack.c.l.bf16 %v220_v4  ;;  %v224_v6 = vunpack.c.h.bf16 %v220_v4 }
  0xbb   :  { %v227_v7 = vmul.f32 0.5, %v223_v5  ;;  %v228_v8 = vmul.f32 0.5, %v224_v6 }
  0xbd   :  { %232 = vst [vmem:[#allocation7 + $0x18] sm:$0xff] %v228_v8 }
  0xbe   :  { %231 = vst [vmem:[#allocation7 + $0x10] sm:$0xff] %v227_v7 }
  0xbf   :  { %245 = dma.vmem_to_hbm [thread:$0]  %s238_s26, 512, %s240_s29, [#allocation4], %s433_s30, %s433_s30, %s434_s4  }
  0xc0   :  { %424 = dma.done.wait [#allocation4], 512  }
  0xc1   :  { %425 = vsyncadd [#allocation4], 4294966784 }
  0xc2   :  { %250 = vsyncpa [#allocation3], 1 }
  0xc3   :  { %251 = vsyncpa [#allocation6], 1 }
  0xc4   :  { %252 = vsyncpa [#allocation4], 1 }

</bundles_post_ra>
